<compile_context>
chip_gen: v6e
topology: v6e:2x2x1
jax: 0.10.0
libtpu: 0.0.40
codegen_flags: <defaults>
</compile_context>

<pallas_src>
import math
import numpy as np
import jax
import jax.numpy as jnp
from jax.experimental import pallas as pl
from jax.experimental.pallas import tpu as pltpu


def deterministic_actor_forward(x, params, *, action_scale=1.0):
    """x: [B, C, T, W] float32 (NCHW). params = (w1,b1,w2,b2,w3,b3) in PyTorch conv shapes."""
    w1, b1, w2, b2, w3, b3 = params
    B, C, T, W = x.shape
    H0, _, KT1, _ = w1.shape            # conv1: (3, features, 3, 1)
    H1, _, T1, _ = w2.shape             # conv2: (32, 3, stride_time, 1)
    Ts = T - 1                          # time extent of x[:, :, 1:, :]
    # NOTE: the single-matmul conv2 formulation depends on the strided conv
    # collapsing the time dim to exactly 1, i.e. stride_time == T - 3.
    assert Ts - (KT1 - 1) == T1, "stride_time must equal T - 3"

    # ---- batch packing: one grid step covers the whole (padded) batch -------
    B_tile = max(1, 256 // W) if W <= 256 else 1
    G = pl.cdiv(B, B_tile)              # == 1 for the module's shapes (B=13, W=16)
    Bp = G * B_tile
    LANES = B_tile * W                  # 256: lane index = local_b * W + w

    x = x.astype(jnp.float32)
    if Bp != B:
        x = jnp.pad(x, ((0, Bp - B), (0, 0), (0, 0), (0, 0)))

    # x[:, :, 1:, :] flattened to a sublane-aligned [G, C*Ts, LANES] slab:
    # row = ci*Ts + t, lane = local_b*W + w.  C*Ts = 40 (multiple of 8) ->
    # dense unpadded input DMA, and every in-kernel read is tile-aligned.
    xs = (x[:, :, 1:, :]
            .reshape(G, B_tile, C, Ts, W)
            .transpose(0, 2, 3, 1, 4)
            .reshape(G, C * Ts, LANES))
    # w0 = x[:, :1, :1, :] packed to [G, 1, LANES]
    w0p = x[:, 0, 0, :].reshape(G, 1, LANES)

    # ---- parameter packing (wrapper glue; all weights stay resident) --------
    # conv1 as block-Toeplitz: phi0[co*T1+t] = sum_{ci,kt} w1[co,ci,kt] * xs[ci*Ts+t+kt]
    w1_k = w1.reshape(H0, C, KT1).astype(jnp.float32)
    co_i, t_i, ci_i, kt_i = np.meshgrid(np.arange(H0), np.arange(T1),
                                        np.arange(C), np.arange(KT1), indexing="ij")
    rows = (co_i * T1 + t_i).reshape(-1)
    cols = (ci_i * Ts + t_i + kt_i).reshape(-1)
    vals = w1_k[co_i.reshape(-1), ci_i.reshape(-1), kt_i.reshape(-1)]
    w1_toe = jnp.zeros((H0 * T1, C * Ts), jnp.float32).at[rows, cols].set(vals)

    b1_b = jnp.broadcast_to(jnp.repeat(b1.astype(jnp.float32), T1)[:, None],
                            (H0 * T1, LANES))
    w2_mat = w2.reshape(H1, H0 * T1).astype(jnp.float32)     # col = co*T1 + t
    b2_b = jnp.broadcast_to(b2.reshape(H1, 1).astype(jnp.float32), (H1, LANES))
    w3_full = w3.reshape(H1 + 1).astype(jnp.float32)
    w3_b = jnp.broadcast_to(w3_full[:H1, None], (H1, LANES))
    w3c_b3 = jnp.concatenate([w3_full[H1:],                  # [2] = [w3_cash, b3]
                              b3.reshape(1).astype(jnp.float32)])

    def kernel(xs_ref, w0_ref, w1t_ref, b1_ref, w2_ref, b2_ref, w3_ref, w3c_ref, o_ref):
        xsl = xs_ref[0]                                      # [C*Ts, LANES] (tile-aligned)
        w0 = w0_ref[0]                                       # [1, LANES]

        # conv1 (kernel (3,1)) + ReLU as one MXU matmul against the
        # block-Toeplitz weight — no sublane-shifted slices, no VPU MAC chains.
        phi0 = jnp.maximum(
            jnp.dot(w1t_ref[...], xsl, preferred_element_type=jnp.float32) + b1_ref[...],
            0.0)                                             # [H0*T1, LANES]

        # conv2: full-height (stride_time,1) kernel with matching stride ->
        # one [H1 x H0*T1] @ [H0*T1 x LANES] matmul.
        phi1 = jnp.maximum(
            jnp.dot(w2_ref[...], phi0, preferred_element_type=jnp.float32) + b2_ref[...],
            0.0)                                             # [H1, LANES]

        # conv3 is a 1x1 conv == weighted channel reduction.  Split it: XLU
        # sublane-reduce the 32 aligned phi1 rows, then add the cash (w0) term
        # as one VPU FMA — avoids a 33-row concat crossing the 8-sublane tile.
        act = (jnp.sum(phi1 * w3_ref[...], axis=0, keepdims=True)
               + w0 * w3c_ref[0] + w3c_ref[1])               # [1, LANES]

        # tanh action gate; single dense full-lane store.
        o_ref[0] = (action_scale * jnp.tanh(act)).astype(o_ref.dtype)

    out = pl.pallas_call(
        kernel,
        out_shape=jax.ShapeDtypeStruct((G, 1, LANES), jnp.float32),
        grid_spec=pltpu.PrefetchScalarGridSpec(
            num_scalar_prefetch=0,
            grid=(G,),
            in_specs=[
                pl.BlockSpec((1, C * Ts, LANES), lambda g: (g, 0, 0)),   # x slab (dense DMA)
                pl.BlockSpec((1, 1, LANES), lambda g: (g, 0, 0)),        # w0 row
                pl.BlockSpec((H0 * T1, C * Ts), lambda g: (0, 0)),       # Toeplitz conv1 weight
                pl.BlockSpec((H0 * T1, LANES), lambda g: (0, 0)),        # b1 (pre-broadcast)
                pl.BlockSpec((H1, H0 * T1), lambda g: (0, 0)),           # conv2 weight
                pl.BlockSpec((H1, LANES), lambda g: (0, 0)),             # b2 (pre-broadcast)
                pl.BlockSpec((H1, LANES), lambda g: (0, 0)),             # w3[:H1] (pre-broadcast)
                pl.BlockSpec(memory_space=pltpu.MemorySpace.SMEM),       # [w3_cash, b3] scalars
            ],
            out_specs=pl.BlockSpec((1, 1, LANES), lambda g: (g, 0, 0)),
        ),
        compiler_params=pltpu.CompilerParams(dimension_semantics=("parallel",)),
    )(xs, w0p, w1_toe, b1_b, w2_mat, b2_b, w3_b, w3c_b3)

    # Wrapper glue: drop batch padding, prepend the constant gated cash-bias
    # column (tanh(1)*scale), flatten to the module's [B, W + 1] output.
    gated = out.reshape(Bp, W)[:B]
    cash = jnp.full((B, 1), action_scale * math.tanh(1.0), jnp.float32)
    return jnp.concatenate([cash, gated], axis=-1)


def reference_forward(x, params, action_scale=1.0):
    """Pure-JAX reference mirroring the PyTorch forward (NCHW / OIHW convs)."""
    w1, b1, w2, b2, w3, b3 = params
    hp = jax.lax.Precision.HIGHEST
    w0 = x[:, :1, :1, :]
    xs = x[:, :, 1:, :]
    phi0 = jax.lax.conv(xs, w1, (1, 1), 'VALID', precision=hp) + b1[None, :, None, None]
    phi0 = jnp.maximum(phi0, 0.0)
    st = w2.shape[2]
    phi1 = jax.lax.conv(phi0, w2, (st, 1), 'VALID', precision=hp) + b2[None, :, None, None]
    phi1 = jnp.maximum(phi1, 0.0)
    h = jnp.concatenate([phi1, w0], axis=1)
    act = jax.lax.conv(h, w3, (1, 1), 'VALID', precision=hp) + b3[None, :, None, None]
    cash = jnp.ones_like(act)[:, :, :, :1]
    act = jnp.concatenate([cash, act], axis=-1)
    act = act.reshape(act.shape[0], -1)
    return action_scale * jnp.tanh(act)


if __name__ == "__main__":
    key = jax.random.PRNGKey(0)
    # state_dim = (4, 11, 16); B=13 exercises the batch-pad path (13 < B_tile=16)
    # while the whole batch still runs in a single grid step (G=1, LANES=256).
    B, FEATURES, T, ASSETS = 13, 4, 11, 16
    H0, H1 = 3, 32
    stride_time = T - 1 - 2                          # = 8

    ks = jax.random.split(key, 7)
    x = jax.random.normal(ks[0], (B, FEATURES, T, ASSETS), jnp.float32)
    w1 = 0.1 * jax.random.normal(ks[1], (H0, FEATURES, 3, 1), jnp.float32)
    b1 = 0.1 * jax.random.normal(ks[2], (H0,), jnp.float32)
    w2 = 0.1 * jax.random.normal(ks[3], (H1, H0, stride_time, 1), jnp.float32)
    b2 = 0.1 * jax.random.normal(ks[4], (H1,), jnp.float32)
    w3 = 0.1 * jax.random.normal(ks[5], (1, H1 + 1, 1, 1), jnp.float32)
    b3 = 0.1 * jax.random.normal(ks[6], (1,), jnp.float32)
    params = (w1, b1, w2, b2, w3, b3)

    out = deterministic_actor_forward(x, params, action_scale=1.0)
    out = jax.block_until_ready(out)

    ref = reference_forward(x, params, action_scale=1.0)
    # Tightened from 2e-2: both paths are f32; only re-association and the
    # EUP-vs-XLA tanh approximation differ.
    np.testing.assert_allclose(np.asarray(out), np.asarray(ref), rtol=1e-4, atol=1e-4)
    assert out.shape == (B, ASSETS + 1)

    # TODO(synk): batch_norm=True branch (BatchNorm2d running stats) not implemented; module used with batch_norm=False.
    print("KERNEL_OK")
</pallas_src>

<mosaic_0001>
module attributes {stable_mosaic.version = 11 : i64} {
  func.func @kernel(%arg0: i32, %arg1: memref<1x40x256xf32, #tpu.memory_space<vmem>>, %arg2: memref<1x1x256xf32, #tpu.memory_space<vmem>>, %arg3: memref<24x40xf32, #tpu.memory_space<vmem>>, %arg4: memref<24x256xf32, #tpu.memory_space<vmem>>, %arg5: memref<32x24xf32, #tpu.memory_space<vmem>>, %arg6: memref<32x256xf32, #tpu.memory_space<vmem>>, %arg7: memref<32x256xf32, #tpu.memory_space<vmem>>, %arg8: memref<2xf32, #tpu.memory_space<smem>>, %arg9: memref<1x1x256xf32, #tpu.memory_space<vmem>>) attributes {dimension_semantics = [#tpu.dimension_semantics<parallel>], iteration_bounds = array<i64: 1>, scalar_prefetch = 0 : i64, scratch_operands = 0 : i64, tpu.core_type = #tpu.core_type<tc>, window_params = [{transform_indices = @transform_0, window_bounds = array<i64: 1, 40, 256>}, {transform_indices = @transform_1, window_bounds = array<i64: 1, 1, 256>}, {pipeline_mode = #tpu.pipeline_mode<synchronous>, transform_indices = @transform_2, window_bounds = array<i64: 24, 40>}, {pipeline_mode = #tpu.pipeline_mode<synchronous>, transform_indices = @transform_3, window_bounds = array<i64: 24, 256>}, {pipeline_mode = #tpu.pipeline_mode<synchronous>, transform_indices = @transform_4, window_bounds = array<i64: 32, 24>}, {pipeline_mode = #tpu.pipeline_mode<synchronous>, transform_indices = @transform_5, window_bounds = array<i64: 32, 256>}, {pipeline_mode = #tpu.pipeline_mode<synchronous>, transform_indices = @transform_6, window_bounds = array<i64: 32, 256>}, {transform_indices = @transform_7, window_bounds = array<i64: 2>}, {transform_indices = @transform_8, window_bounds = array<i64: 1, 1, 256>}]} {
    %c0 = arith.constant 0 : index
    %c0_0 = arith.constant 0 : index
    %c0_1 = arith.constant 0 : index
    %0 = vector.load %arg1[%c0, %c0_0, %c0_1] : memref<1x40x256xf32, #tpu.memory_space<vmem>>, vector<1x40x256xf32>
    %1 = vector.shape_cast %0 : vector<1x40x256xf32> to vector<40x256xf32>
    %c0_2 = arith.constant 0 : index
    %c0_3 = arith.constant 0 : index
    %c0_4 = arith.constant 0 : index
    %2 = vector.load %arg2[%c0_2, %c0_3, %c0_4] : memref<1x1x256xf32, #tpu.memory_space<vmem>>, vector<1x1x256xf32>
    %3 = vector.shape_cast %2 : vector<1x1x256xf32> to vector<1x256xf32>
    %c0_5 = arith.constant 0 : index
    %c0_6 = arith.constant 0 : index
    %4 = vector.load %arg3[%c0_5, %c0_6] : memref<24x40xf32, #tpu.memory_space<vmem>>, vector<24x40xf32>
    %cst = arith.constant dense<0.000000e+00> : vector<24x256xf32>
    %5 = tpu.matmul %4, %1, %cst {dimension_numbers = #tpu.dot_dimension_numbers<[1], [0], [0], [1], [0, 0, 1, 1], [], []>} : vector<24x40xf32>, vector<40x256xf32>, vector<24x256xf32> -> vector<24x256xf32>
    %c0_7 = arith.constant 0 : index
    %c0_8 = arith.constant 0 : index
    %6 = vector.load %arg4[%c0_7, %c0_8] : memref<24x256xf32, #tpu.memory_space<vmem>>, vector<24x256xf32>
    %7 = arith.addf %5, %6 : vector<24x256xf32>
    %cst_9 = arith.constant 0.000000e+00 : f32
    %8 = vector.broadcast %cst_9 : f32 to vector<24x256xf32>
    %9 = arith.maximumf %7, %8 : vector<24x256xf32>
    %c0_10 = arith.constant 0 : index
    %c0_11 = arith.constant 0 : index
    %10 = vector.load %arg5[%c0_10, %c0_11] : memref<32x24xf32, #tpu.memory_space<vmem>>, vector<32x24xf32>
    %cst_12 = arith.constant dense<0.000000e+00> : vector<32x256xf32>
    %11 = tpu.matmul %10, %9, %cst_12 {dimension_numbers = #tpu.dot_dimension_numbers<[1], [0], [0], [1], [0, 0, 1, 1], [], []>} : vector<32x24xf32>, vector<24x256xf32>, vector<32x256xf32> -> vector<32x256xf32>
    %c0_13 = arith.constant 0 : index
    %c0_14 = arith.constant 0 : index
    %12 = vector.load %arg6[%c0_13, %c0_14] : memref<32x256xf32, #tpu.memory_space<vmem>>, vector<32x256xf32>
    %13 = arith.addf %11, %12 : vector<32x256xf32>
    %cst_15 = arith.constant 0.000000e+00 : f32
    %14 = vector.broadcast %cst_15 : f32 to vector<32x256xf32>
    %15 = arith.maximumf %13, %14 : vector<32x256xf32>
    %c0_16 = arith.constant 0 : index
    %c0_17 = arith.constant 0 : index
    %16 = vector.load %arg7[%c0_16, %c0_17] : memref<32x256xf32, #tpu.memory_space<vmem>>, vector<32x256xf32>
    %17 = arith.mulf %15, %16 : vector<32x256xf32>
    %cst_18 = arith.constant dense<0.000000e+00> : vector<256xf32>
    %18 = vector.multi_reduction <add>, %17, %cst_18 [0] : vector<32x256xf32> to vector<256xf32>
    %19 = vector.shape_cast %18 : vector<256xf32> to vector<1x256xf32>
    %c0_19 = arith.constant 0 : index
    %20 = memref.load %arg8[%c0_19] : memref<2xf32, #tpu.memory_space<smem>>
    %21 = vector.broadcast %20 : f32 to vector<1x256xf32>
    %22 = arith.mulf %3, %21 : vector<1x256xf32>
    %23 = arith.addf %19, %22 : vector<1x256xf32>
    %c1 = arith.constant 1 : index
    %24 = memref.load %arg8[%c1] : memref<2xf32, #tpu.memory_space<smem>>
    %25 = vector.broadcast %24 : f32 to vector<1x256xf32>
    %26 = arith.addf %23, %25 : vector<1x256xf32>
    %27 = math.tanh %26 : vector<1x256xf32>
    %cst_20 = arith.constant 1.000000e+00 : f32
    %28 = vector.broadcast %cst_20 : f32 to vector<1x256xf32>
    %29 = arith.mulf %28, %27 : vector<1x256xf32>
    %c0_21 = arith.constant 0 : index
    %c0_22 = arith.constant 0 : index
    %c0_23 = arith.constant 0 : index
    %30 = vector.load %arg9[%c0_21, %c0_22, %c0_23] : memref<1x1x256xf32, #tpu.memory_space<vmem>>, vector<1x1x256xf32>
    %31 = vector.shape_cast %30 : vector<1x1x256xf32> to vector<1x256xf32>
    %32 = vector.shape_cast %29 : vector<1x256xf32> to vector<1x1x256xf32>
    tpu.vector_store %arg9[%c0_21, %c0_22, %c0_23], %32 {strides = array<i32>} : memref<1x1x256xf32, #tpu.memory_space<vmem>>, vector<1x1x256xf32>,
    return
  }
  func.func @transform_0(%arg0: i32) -> (i32, i32, i32) {
    %c0_i32 = arith.constant 0 : i32
    %c0_i32_0 = arith.constant 0 : i32
    %c0_i32_1 = arith.constant 0 : i32
    return %arg0, %c0_i32, %c0_i32_0 : i32, i32, i32
  }
  func.func @transform_1(%arg0: i32) -> (i32, i32, i32) {
    %c0_i32 = arith.constant 0 : i32
    %c0_i32_0 = arith.constant 0 : i32
    %c0_i32_1 = arith.constant 0 : i32
    return %arg0, %c0_i32, %c0_i32_0 : i32, i32, i32
  }
  func.func @transform_2(%arg0: i32) -> (i32, i32) {
    %c0_i32 = arith.constant 0 : i32
    %c0_i32_0 = arith.constant 0 : i32
    %c0_i32_1 = arith.constant 0 : i32
    return %c0_i32, %c0_i32_0 : i32, i32
  }
  func.func @transform_3(%arg0: i32) -> (i32, i32) {
    %c0_i32 = arith.constant 0 : i32
    %c0_i32_0 = arith.constant 0 : i32
    %c0_i32_1 = arith.constant 0 : i32
    return %c0_i32, %c0_i32_0 : i32, i32
  }
  func.func @transform_4(%arg0: i32) -> (i32, i32) {
    %c0_i32 = arith.constant 0 : i32
    %c0_i32_0 = arith.constant 0 : i32
    %c0_i32_1 = arith.constant 0 : i32
    return %c0_i32, %c0_i32_0 : i32, i32
  }
  func.func @transform_5(%arg0: i32) -> (i32, i32) {
    %c0_i32 = arith.constant 0 : i32
    %c0_i32_0 = arith.constant 0 : i32
    %c0_i32_1 = arith.constant 0 : i32
    return %c0_i32, %c0_i32_0 : i32, i32
  }
  func.func @transform_6(%arg0: i32) -> (i32, i32) {
    %c0_i32 = arith.constant 0 : i32
    %c0_i32_0 = arith.constant 0 : i32
    %c0_i32_1 = arith.constant 0 : i32
    return %c0_i32, %c0_i32_0 : i32, i32
  }
  func.func @transform_7(%arg0: i32) -> i32 {
    %c0_i32 = arith.constant 0 : i32
    %c0_i32_0 = arith.constant 0 : i32
    return %c0_i32 : i32
  }
  func.func @transform_8(%arg0: i32) -> (i32, i32, i32) {
    %c0_i32 = arith.constant 0 : i32
    %c0_i32_0 = arith.constant 0 : i32
    %c0_i32_1 = arith.constant 0 : i32
    return %arg0, %c0_i32, %c0_i32_0 : i32, i32, i32
  }
}

</mosaic_0001>

<bundles_post_ra>
// kernel: tpu_custom_call.1
= control target key start
LH: loop header
LB: loop body
LE: loop exit
PB: predicated region body
PF: predicated region fallthrough
CT: control target
= control target key end

     0   :  { %13 = vsyncpa [#allocation3], 0  ;;  %s745_s0 = inlined_call_operand.hbm [shape: f32[1,40,256], index: 0, kind: input, shape index: {}]   ;;  %s746_s1 = inlined_call_operand.hbm [shape: f32[1,1,256], index: 1, kind: input, shape index: {}]   ;;  %s747_s2 = inlined_call_operand.hbm [shape: f32[24,40], index: 2, kind: input, shape index: {}]   ;;  %s748_s3 = inlined_call_operand.hbm [shape: f32[24,256], index: 3, kind: input, shape index: {}]   ;;  %s749_s4 = inlined_call_operand.vmem [shape: f32[32,24], index: 4, kind: input, shape index: {}]   ;;  %s750_s5 = inlined_call_operand.vmem [shape: f32[32,256], index: 5, kind: input, shape index: {}]   ;;  %s751_s6 = inlined_call_operand.hbm [shape: f32[32,256], index: 6, kind: input, shape index: {}]   ;;  %s752_s7 = inlined_call_operand.vmem [shape: f32[2], index: 7, kind: input, shape index: {}]   ;;  %s753_s8 = inlined_call_operand.hbm [shape: f32[1,1,256], index: 8, kind: output, shape index: {}]  }
   0x1   :  { %14 = vsyncpa [#allocation7], 0 }
   0x2   :  { %15 = vsyncpa [#allocation10], 0 }
   0x3   :  { %16 = vsyncpa [#allocation5], 0 }
   0x4   :  { %17 = vsyncpa [#allocation4], 0  ;;  %s614_s27 = smov [#allocation6]  }
   0x5   :  { %s36_s28 = sshll.u32 %s614_s27, 4  ;;  %s37_s28 = int_to_ptr.vmem [resolvable:$true] %s36_s28 }
   0x6   :  { %s480_s29 = scalar_lea.vmem %s37_s28, 32  ;;  %p485_p1 = scmp.lt.s32.totalorder %s37_s28, %s37_s28 }
   0x7   :  { %p481_p0 = scmp.ne.s32.totalorder %s37_s28, %s480_s29  ;;  %p486_p2 = scmp.lt.s32.totalorder %s480_s29, %s480_s29 }
   0x9   :  { %p487_p3 = por %p486_p2, %p485_p1 }
   0xb   :  { %p488_p4 = pnand %p487_p3, %p481_p0 }
   0xd   :  { %491 = shalt.err (!%p488_p4)
}
   0xe   :  { %39 = dma.hbm_to_vmem [thread:$0]  %s746_s1, 32, %s37_s28, [#allocation7]  }
   0xf   :  { %s615_s10 = smov [#allocation9]   ;;  %s616_s12 = smov [#allocation2]  }
  0x10   :  { %s57_s11 = sshll.u32 %s615_s10, 4  ;;  %s23_s13 = sshll.u32 %s616_s12, 4  ;;  %s58_s11 = int_to_ptr.vmem [resolvable:$true] %s57_s11  ;;  %s24_s13 = int_to_ptr.vmem [resolvable:$true] %s23_s13 }
  0x11   :  { %s500_s14 = scalar_lea.vmem %s58_s11, 768  ;;  %p505_p6 = scmp.lt.s32.totalorder %s58_s11, %s58_s11 }
  0x12   :  { %p501_p5 = scmp.ne.s32.totalorder %s58_s11, %s500_s14  ;;  %p506_p7 = scmp.lt.s32.totalorder %s500_s14, %s500_s14 }
  0x14   :  { %p507_p8 = por %p506_p7, %p505_p6 }
  0x16   :  { %p508_p9 = pnand %p507_p8, %p501_p5 }
  0x18   :  { %511 = shalt.err (!%p508_p9)
}
  0x19   :  { %s617_s15 = smov 256   ;;  %s618_s16 = smov 16  }
  0x1a   :  { %63 = dma.hbm_to_vmem [thread:$0]  %s748_s3, 768, %s58_s11, [#allocation10], %s617_s15, %s617_s15, %s618_s16  }
  0x1b   :  { %s520_s1 = scalar_lea.vmem %s24_s13, 1280  ;;  %p525_p11 = scmp.lt.s32.totalorder %s24_s13, %s24_s13 }
  0x1c   :  { %p521_p10 = scmp.ne.s32.totalorder %s24_s13, %s520_s1  ;;  %p526_p12 = scmp.lt.s32.totalorder %s520_s1, %s520_s1 }
  0x1e   :  { %p527_p13 = por %p526_p12, %p525_p11 }
  0x20   :  { %p528_p0 = pnand %p527_p13, %p521_p10 }
  0x22   :  { %531 = shalt.err (!%p528_p0)
}
  0x23   :  { %29 = dma.hbm_to_vmem [thread:$0]  %s745_s0, 1280, %s24_s13, [#allocation3], %s617_s15, %s617_s15, %s618_s16  }
  0x24   :  { %s619_s21 = smov [#allocation8]  }
  0x25   :  { %s45_s22 = sshll.u32 %s619_s21, 4  ;;  %s46_s22 = int_to_ptr.vmem [resolvable:$true] %s45_s22 }
  0x26   :  { %s540_s23 = scalar_lea.vmem %s46_s22, 384  ;;  %p545_p2 = scmp.lt.s32.totalorder %s46_s22, %s46_s22 }
  0x27   :  { %p541_p1 = scmp.ne.s32.totalorder %s46_s22, %s540_s23  ;;  %p546_p3 = scmp.lt.s32.totalorder %s540_s23, %s540_s23 }
  0x29   :  { %p547_p4 = por %p546_p3, %p545_p2 }
  0x2b   :  { %p548_p5 = pnand %p547_p4, %p541_p1 }
  0x2d   :  { %551 = shalt.err (!%p548_p5)
}
  0x2e   :  { %s620_s3 = smov 128   ;;  %s621_s24 = smov 8  }
  0x2f   :  { %51 = dma.hbm_to_vmem [thread:$0]  %s747_s2, 384, %s46_s22, [#allocation7], %s620_s3, %s620_s3, %s621_s24  }
  0x30   :  { %s86_s0 = sshll.u32 %s752_s7, 4  ;;  %s622_s29 = smov [#allocation11]   ;;  %s87_s0 = int_to_ptr.vmem [resolvable:$true] %s86_s0 }
  0x31   :  { %s73_s30 = sshll.u32 %s622_s29, 4  ;;  %s74_s30 = int_to_ptr.vmem [resolvable:$true] %s73_s30 }
  0x32   :  { %s560_s9 = scalar_lea.vmem %s74_s30, 1024  ;;  %p565_p7 = scmp.lt.s32.totalorder %s74_s30, %s74_s30 }
  0x33   :  { %p561_p6 = scmp.ne.s32.totalorder %s74_s30, %s560_s9  ;;  %p566_p8 = scmp.lt.s32.totalorder %s560_s9, %s560_s9 }
  0x35   :  { %p567_p9 = por %p566_p8, %p565_p7 }
  0x37   :  { %p568_p10 = pnand %p567_p9, %p561_p6 }
  0x39   :  { %571 = shalt.err (!%p568_p10)
}
  0x3a   :  { %79 = dma.hbm_to_vmem [thread:$0]  %s751_s6, 1024, %s74_s30, [#allocation10], %s617_s15, %s617_s15, %s618_s16  }
  0x3b   :  { %s572_s11 = scalar_lea.vmem %s87_s0, 16  ;;  %p577_p12 = scmp.lt.s32.totalorder %s87_s0, %s87_s0 }
  0x3c   :  { %p573_p11 = scmp.ne.s32.totalorder %s87_s0, %s572_s11  ;;  %p578_p13 = scmp.lt.s32.totalorder %s572_s11, %s572_s11 }
  0x3e   :  { %p579_p0 = por %p578_p13, %p577_p12 }
  0x40   :  { %p580_p1 = pnand %p579_p0, %p573_p11 }
  0x42   :  { %583 = shalt.err (!%p580_p1)
}
  0x43   :  { %s623_s7 = smov [#allocation12]  }
  0x44   :  { %89 = dma.vmem_to_smem %s87_s0, 16, %s623_s7, [#allocation5]  }
  0x45   :  { %604 = dma.done.wait [#allocation3], 1280  }
  0x46   :  { %605 = vsyncadd [#allocation3], 4294966016 }
  0x47   :  { %606 = dma.done.wait [#allocation7], 416  }
  0x48   :  { %607 = vsyncadd [#allocation7], 4294966880 }
  0x49   :  { %608 = dma.done.wait [#allocation10], 1792  }
  0x4a   :  { %609 = vsyncadd [#allocation10], 4294965504 }
  0x4b   :  { %610 = dma.done.wait [#allocation5], 16  }
  0x4c   :  { %611 = vsyncadd [#allocation5], 4294967280 }
  0x4d   :  { %108 = sfence }
  0x4e   :  { %v118_v0 = vld [vmem:[#allocation2 + $0x48] sm:$0xff]  ;;  %v117_v1 = vld [vmem:[#allocation2 + $0x40] sm:$0xff]  ;;  %v116_v2 = vld [vmem:[#allocation2 + $0x38] sm:$0xff]  ;;  %v624_v4 = vmov 0.0   ;;  %vm129_vm0 = vcmask 326656   ;;  %vm240_vm1 = vcmask 195584  }
  0x4f   :  { %161 = vmatprep.subr.mxu0 %v118_v0  ;;  %v115_v3 = vld [vmem:[#allocation2 + $0x30] sm:$0xff]  ;;  %203 = vmatprep.mubr.f32.mxu0 %v624_v4  ;;  %v114_v5 = vld [vmem:[#allocation2 + $0x28] sm:$0xff]  ;;  %v113_v6 = vld [vmem:[#allocation2 + $0x20] sm:$0xff]  ;;  %s384_s9 = sld [smem:[#allocation12]]  ;;  %s626_s10 = smov [#allocation13]  }
  0x50   :  { %162 = vmatpush1.msra.mxu0 %v117_v1  ;;  %317 = vmatprep.mubr.f32.mxu1 %v624_v4  ;;  %v112_v7 = vld [vmem:[#allocation2 + $0x18] sm:$0xff]  ;;  %v111_v8 = vld [vmem:[#allocation2 + $0x10] sm:$0xff]  ;;  %v110_v9 = vld [vmem:[#allocation2 + $0x8] sm:$0xff]  ;;  %s435_s2 = sshll.u32 %s626_s10, 4  ;;  %s436_s2 = int_to_ptr.vmem [resolvable:$true] %s435_s2 }
  0x51   :  { %163 = vmatprep.subr.mxu0 %v116_v2  ;;  %v109_v10 = vld [vmem:[#allocation2] sm:$0xff]  ;;  %v120_v11 = vld [vmem:[#allocation8] sm:$0xff]  ;;  %v127_v18 = vld [vmem:[#allocation9 + $0x20] sm:$0xff]  ;;  %s584_s11 = scalar_lea.vmem %s436_s2, 32  ;;  %p589_p3 = scmp.lt.s32.totalorder %s436_s2, %s436_s2 }
  0x52   :  { %164 = vmatpush1.msra.mxu0 %v115_v3  ;;  %v121_v12 = vld [vmem:[#allocation8 + $0x8] sm:$0xff]  ;;  %v122_v13 = vld [vmem:[#allocation8 + $0x10] sm:$0xff]  ;;  %v128_v21 = vld [vmem:[#allocation9 + $0x28] sm:$0xff]  ;;  %p585_p2 = scmp.ne.s32.totalorder %s436_s2, %s584_s11  ;;  %p590_p4 = scmp.lt.s32.totalorder %s584_s11, %s584_s11 }
  0x53   :  { %165 = vmatprep.subr.mxu0 %v114_v5  ;;  %v126_v19 = vld [vmem:[#allocation9 + $0x18] sm:$0xff]  ;;  %v125_v22 = vld [vmem:[#allocation9 + $0x10] sm:$0xff]  ;;  %v124_v23 = vld [vmem:[#allocation9 + $0x8] sm:$0xff] }
  0x54   :  { %166 = vmatpush1.msra.mxu0 %v113_v6  ;;  %v123_v26 = vld [vmem:[#allocation9] sm:$0xff]  ;;  %v228_v38 = vld [vmem:[%s749_s4] sm:$0xff]  ;;  %v231_v41 = vld [vmem:[%s749_s4 + $0x18] sm:$0xff]  ;;  %p591_p5 = por %p590_p4, %p589_p3 }
  0x55   :  { %167 = vmatprep.subr.mxu0 %v112_v7  ;;  %v229_v39 = vld [vmem:[%s749_s4 + $0x8] sm:$0xff]  ;;  %v230_v40 = vld [vmem:[%s749_s4 + $0x10] sm:$0xff]  ;;  %v232_v43 = vld [vmem:[%s750_s5] sm:$0xff] }
  0x56   :  { %168 = vmatpush1.msra.mxu0 %v111_v8  ;;  %v234_v45 = vld [vmem:[%s750_s5 + $0x10] sm:$0xff]  ;;  %v233_v46 = vld [vmem:[%s750_s5 + $0x8] sm:$0xff]  ;;  %v235_v49 = vld [vmem:[%s750_s5 + $0x18] sm:$0xff]  ;;  %p592_p6 = pnand %p591_p5, %p585_p2 }
  0x57   :  { %169 = vmatprep.subr.mxu0 %v110_v9  ;;  %v236_v53 = vld [vmem:[%s750_s5 + $0x20] sm:$0xff]  ;;  %v352_v57 = vld [vmem:[#allocation11 + $0x10] sm:$0xff]  ;;  %v353_v0 = vld [vmem:[#allocation11 + $0x18] sm:$0xff] }
  0x58   :  { %170 = vmatpush1.msra.mxu0 %v109_v10  ;;  %v237_v59 = vld [vmem:[%s750_s5 + $0x28] sm:$0xff]  ;;  %v350_v60 = vld [vmem:[#allocation11] sm:$0xff]  ;;  %v238_v3 = vld [vmem:[%s750_s5 + $0x30] sm:$0xff] }
  0x59   :  { %447 = vmatmul.mubr.msk.f32.vlgmr.msra.gmra.mxu0 %vm129_vm0, %v120_v11  ;;  %v354_v1 = vld [vmem:[#allocation11 + $0x20] sm:$0xff]  ;;  %v355_v9 = vld [vmem:[#allocation11 + $0x28] sm:$0xff] }
  0x5a   :  { %209 = vmatprep.mubr.f32.mxu0 %v624_v4  ;;  %v239_v11 = vld [vmem:[%s750_s5 + $0x38] sm:$0xff]  ;;  %s454_s5 = sld [smem:[#allocation12 + $0x1]] }
  0x5d   :  { %448 = vmatmul.mubr.msk.f32.gmra.mxu0 %vm129_vm0, %v121_v12 }
  0x5e   :  { %215 = vmatprep.mubr.f32.mxu0 %v624_v4 }
  0x61   :  { %449 = vmatmul.mubr.msk.f32.gmra.mxu0 %vm129_vm0, %v122_v13 }
 0x119   :  { %v205_v14 = vpop.f32.mrf.mxu0 }
 0x11a   :  { %v206_v32 = vadd.f32 %v205_v14, %v123_v26 }
 0x11b   :  { %v207_v15 = vpop.f32.mrf.mxu0 }
 0x11c   :  { %v208_v30 = vadd.f32 %v207_v15, %v124_v23  ;;  %v222_v37 = vmax.f32 %v206_v32, 0.0  ;;  %v357_v23 = vld [vmem:[#allocation11 + $0x38] sm:$0xff] }
 0x11d   :  { %v211_v16 = vpop.f32.mrf.mxu0 }
 0x11e   :  { %v212_v29 = vadd.f32 %v211_v16, %v125_v22  ;;  %v223_v36 = vmax.f32 %v208_v30, 0.0 }
 0x11f   :  { %v213_v17 = vpop.f32.mrf.mxu0 }
 0x120   :  { %v214_v27 = vadd.f32 %v213_v17, %v126_v19  ;;  %v224_v35 = vmax.f32 %v212_v29, 0.0  ;;  %v356_v17 = vld [vmem:[#allocation11 + $0x30] sm:$0xff] }
 0x121   :  { %v217_v20 = vpop.f32.mrf.mxu0 }
 0x122   :  { %v218_v24 = vadd.f32 %v217_v20, %v127_v18  ;;  %v225_v34 = vmax.f32 %v214_v27, 0.0 }
 0x123   :  { %v219_v25 = vpop.f32.mrf.mxu0 }
 0x124   :  { %v220_v28 = vadd.f32 %v219_v25, %v128_v21  ;;  %v226_v33 = vmax.f32 %v218_v24, 0.0  ;;  %v388_v24 = vlaneseq }
 0x126   :  { %v227_v31 = vmax.f32 %v220_v28, 0.0  ;;  %vm426_vm2 = vcmp.lt.s32.totalorder %v388_v24, 256 }
 0x128   :  { %279 = vmatprep.subr.mxu1 %v227_v31 }
 0x129   :  { %280 = vmatpush1.msra.mxu1 %v226_v33 }
 0x12a   :  { %281 = vmatprep.subr.mxu1 %v225_v34  ;;  %v389_v34 = vshrl.u32 %v388_v24, 7 }
 0x12b   :  { %282 = vmatpush1.msra.mxu1 %v224_v35  ;;  %v119_v35 = vld [vmem:[#allocation6] sm:$0x3] }
 0x12c   :  { %283 = vmatprep.subr.mxu1 %v223_v36  ;;  %v385_v36 = vstv %s384_s9 }
 0x12d   :  { %284 = vmatpush1.msra.mxu1 %v222_v37 }
 0x12e   :  { %450 = vmatmul.mubr.msk.f32.vlgmr.msra.gmra.mxu1 %vm240_vm1, %v228_v38 }
 0x12f   :  { %323 = vmatprep.mubr.f32.mxu1 %v624_v4 }
 0x132   :  { %451 = vmatmul.mubr.msk.f32.gmra.mxu1 %vm240_vm1, %v229_v39 }
 0x133   :  { %329 = vmatprep.mubr.f32.mxu1 %v624_v4 }
 0x136   :  { %452 = vmatmul.mubr.msk.f32.gmra.mxu1 %vm240_vm1, %v230_v40 }
 0x137   :  { %335 = vmatprep.mubr.f32.mxu1 %v624_v4  ;;  %v351_v4 = vld [vmem:[#allocation11 + $0x8] sm:$0xff] }
 0x13a   :  { %453 = vmatmul.mubr.msk.f32.gmra.mxu1 %vm240_vm1, %v231_v41  ;;  %v386_v41 = vmul.f32 %v385_v36, %v119_v35 }
 0x1ee   :  { %v319_v42 = vpop.f32.mrf.mxu1 }
 0x1ef   :  { %v320_v47 = vadd.f32 %v319_v42, %v232_v43  ;;  %v390_v42 = vsub.s32 0, %v389_v34 }
 0x1f0   :  { %v321_v44 = vpop.f32.mrf.mxu1 }
 0x1f1   :  { %v322_v51 = vadd.f32 %v321_v44, %v233_v46  ;;  %v342_v56 = vmax.f32 %v320_v47, 0.0 }
 0x1f2   :  { %v325_v48 = vpop.f32.mrf.mxu1 }
 0x1f3   :  { %v326_v50 = vadd.f32 %v325_v48, %v234_v45  ;;  %v343_v63 = vmax.f32 %v322_v51, 0.0  ;;  %v358_v8 = vmul.f32 %v350_v60, %v342_v56  ;;  %v394_v45 = vsub.s32 1, %v389_v34 }
 0x1f4   :  { %v327_v52 = vpop.f32.mrf.mxu1  ;;  %v391_v48 = vrot.slane %v386_v41, %v390_v42 }
 0x1f5   :  { %v344_v54 = vmax.f32 %v326_v50, 0.0  ;;  %v328_v55 = vadd.f32 %v327_v52, %v235_v49  ;;  %v359_v16 = vmul.f32 %v351_v4, %v343_v63  ;;  %v395_v51 = vrot.slane %v386_v41, %v394_v45 }
 0x1f6   :  { %v331_v58 = vpop.f32.mrf.mxu1  ;;  %v401_v52 = vstv %s454_s5 }
 0x1f7   :  { %v345_v61 = vmax.f32 %v328_v55, 0.0  ;;  %v332_v62 = vadd.f32 %v331_v58, %v236_v53  ;;  %v360_v5 = vmul.f32 %v352_v57, %v344_v54  ;;  %v625_v58 = vmov 1966171168  }
 0x1f8   :  { %v333_v2 = vpop.f32.mrf.mxu1 }
 0x1f9   :  { %v346_v6 = vmax.f32 %v332_v62, 0.0  ;;  %v334_v7 = vadd.f32 %v333_v2, %v237_v59  ;;  %v361_v12 = vmul.f32 %v353_v0, %v345_v61  ;;  %v366_v19 = vadd.f32 %v360_v5, %v358_v8 }
 0x1fa   :  { %v337_v10 = vpop.f32.mrf.mxu1  ;;  %v410_v59 = vunpack.c.l.s4 %v625_v58 }
 0x1fb   :  { %v362_v13 = vmul.f32 %v354_v1, %v346_v6  ;;  %v347_v14 = vmax.f32 %v334_v7, 0.0  ;;  %v338_v15 = vadd.f32 %v337_v10, %v238_v3  ;;  %v375_v25 = vadd.f32 %v361_v12, %v359_v16 }
 0x1fc   :  { %v339_v18 = vpop.f32.mrf.mxu1  ;;  %v411_v60 = vunpack.c.0.s8 %v410_v59 }
 0x1fd   :  { %v363_v20 = vmul.f32 %v355_v9, %v347_v14  ;;  %v348_v21 = vmax.f32 %v338_v15, 0.0  ;;  %v340_v22 = vadd.f32 %v339_v18, %v239_v11  ;;  %v367_v26 = vadd.f32 %v366_v19, %v362_v13 }
 0x1fe   :  { %v414_v62 = vsub.s32 %v411_v60, %v389_v34 }
 0x1ff   :  { %v364_v27 = vmul.f32 %v356_v17, %v348_v21  ;;  %v349_v28 = vmax.f32 %v340_v22, 0.0  ;;  %v376_v29 = vadd.f32 %v375_v25, %v363_v20 }
 0x201   :  { %v368_v30 = vadd.f32 %v367_v26, %v364_v27  ;;  %v365_v31 = vmul.f32 %v357_v23, %v349_v28 }
 0x203   :  { %v369_v32 = vrot.slane %v368_v30, 4  ;;  %v377_v33 = vadd.f32 %v376_v29, %v365_v31 }
 0x205   :  { %v370_v37 = vadd.f32 %v369_v32, %v368_v30  ;;  %v378_v38 = vrot.slane %v377_v33, 4 }
 0x207   :  { %v371_v39 = vrot.slane %v370_v37, 2  ;;  %v379_v40 = vadd.f32 %v378_v38, %v377_v33 }
 0x209   :  { %v372_v43 = vadd.f32 %v371_v39, %v370_v37  ;;  %v380_v44 = vrot.slane %v379_v40, 2 }
 0x20b   :  { %v373_v46 = vrot.slane %v372_v43, 1  ;;  %v381_v47 = vadd.f32 %v380_v44, %v379_v40 }
 0x20d   :  { %v374_v49 = vadd.f32 %v373_v46, %v372_v43  ;;  %v382_v50 = vrot.slane %v381_v47, 1 }
 0x20f   :  { %v383_v53 = vadd.f32 %v382_v50, %v381_v47  ;;  %v398_v54 = vadd.f32 %v391_v48, %v374_v49 }
 0x211   :  { %v399_v55 = vadd.f32 %v395_v51, %v383_v53  ;;  %v402_v56 = vadd.f32 %v401_v52, %v398_v54 }
 0x213   :  { %v403_v57 = vadd.f32 %v401_v52, %v399_v55  ;;  %468 = vtanh.f32 %v402_v56 }
 0x215   :  { %470 = vtanh.f32 %v403_v57 }
 0x220   :  { %v469_v61 = vpop.eup %468 }
 0x222   :  { %v471_v63 = vpop.eup %470 }
 0x223   :  { %v408_v0 = vcombine.low %v469_v61, %v471_v63 }
 0x225   :  { %v415_v1 = vrot.slane %v408_v0, %v414_v62 }
 0x227   :  { %v422_v2 = vrot.slane %v415_v1, %v414_v62 }
 0x229   :  { %428 = vst.msk [vmem:[#allocation13] sm:$0x3] %vm426_vm2, %v422_v2 }
 0x22a   :  { %595 = shalt.err (!%p592_p6)
}
 0x22b   :  { %438 = dma.vmem_to_hbm [thread:$0]  %s436_s2, 32, %s753_s8, [#allocation4]  }
 0x22c   :  { %612 = dma.done.wait [#allocation4], 32  }
 0x22d   :  { %613 = vsyncadd [#allocation4], 4294967264 }
 0x22e   :  { %442 = vsyncpa [#allocation3], 1 }
 0x22f   :  { %443 = vsyncpa [#allocation7], 1 }
 0x230   :  { %444 = vsyncpa [#allocation10], 1 }
 0x231   :  { %445 = vsyncpa [#allocation4], 1 }
 0x232   :  { %446 = vsyncpa [#allocation5], 1 }

</bundles_post_ra>
